<compile_context>
chip_gen: v5e
topology: v5e:2x2
jax: 0.10.0
libtpu: 0.0.40
codegen_flags: <defaults>
</compile_context>

<pallas_src>
import functools
import math

import jax
import jax.numpy as jnp
from jax.experimental import pallas as pl
from jax.experimental.pallas import tpu as pltpu


def vcopn_kernel(x_ref, w1_ref, b1_ref, w2_ref, b2_ref, out_ref, acc_ref,
                 *, inv_pool_count):
    # x_ref : (1, T_blk, C, HW)   slab for (batch b, time-block t)
    # w1    : (C, H1)   b1: (1, H1)   w2: (H1, NC)   b2: (1, NC)
    # out   : (1, 1, NC)
    # acc   : (C, HW) f32 running elementwise sum over T for this batch element
    t = pl.program_id(1)

    @pl.when(t == 0)
    def _init():
        acc_ref[...] = jnp.zeros_like(acc_ref)

    # Elementwise accumulation on the VPU (no per-step cross-lane reduction).
    x = x_ref[0].astype(jnp.float32)          # (T_blk, C, HW)
    acc_ref[...] += jnp.sum(x, axis=0)        # (C, HW)

    # Pooling finalize + fc MLP, once per batch element.
    @pl.when(t == pl.num_programs(1) - 1)
    def _finalize():
        # Single cross-lane reduce + scale: AdaptiveAvgPool3d(1).
        pooled = jnp.sum(acc_ref[...], axis=-1, keepdims=True) * inv_pool_count  # (C, 1)
        # First linear as broadcast-multiply + sublane reduce => lane-dense (1, H1)
        # row without any (C,1)->(1,C) relayout or transposed-LHS matmul.
        h = jnp.sum(pooled * w1_ref[...], axis=0, keepdims=True) + b1_ref[...]   # (1, H1)
        h = jnp.maximum(h, 0.0)                                                  # ReLU
        logits = jnp.dot(h, w2_ref[...],
                         preferred_element_type=jnp.float32) + b2_ref[...]       # (1, NC)
        out_ref[0] = logits.astype(out_ref.dtype)


def vcopn_forward(x, w1, b1, w2, b2, *, input_slab_budget_bytes=8 * 1024 * 1024):
    """VCOPN forward.

    x : (B, T, C, H, W) features (identity base_network => C == feature_size)
    w1: (C, H1)   b1: (1, H1) or (H1,)   w2: (H1, NC)   b2: (1, NC) or (NC,)
    Returns logits (B, NC) float32.
    """
    B, T, C, H, W = x.shape
    HW = H * W
    H1 = w1.shape[1]
    NC = w2.shape[1]

    # Free contiguous view — the PyTorch permute(0,2,1,3,4) is dropped because
    # the global mean over (T, H, W) is permutation invariant.
    feats = x.reshape(B, T, C, HW)

    # Biases as lane-dense rows; weights untouched (row orientation).
    b1r = jnp.reshape(b1, (1, H1))
    b2r = jnp.reshape(b2, (1, NC))

    # Fold as much of T as fits into one block so per-grid-step overhead is
    # amortized over one large contiguous DMA (double-buffered slab <= budget).
    per_t_bytes = C * HW * x.dtype.itemsize
    cap = max(1, input_slab_budget_bytes // (2 * per_t_bytes))
    t_blk = 1
    for cand in range(1, T + 1):
        if T % cand == 0 and cand <= cap:
            t_blk = cand
    n_t = T // t_blk

    kernel = functools.partial(vcopn_kernel,
                               inv_pool_count=1.0 / float(T * HW))

    grid_spec = pltpu.PrefetchScalarGridSpec(
        num_scalar_prefetch=0,
        grid=(B, n_t),                                    # batch parallel, time = reduction
        in_specs=[
            pl.BlockSpec((1, t_blk, C, HW), lambda b, t: (b, t, 0, 0)),
            pl.BlockSpec((C, H1), lambda b, t: (0, 0)),   # resident weights / biases
            pl.BlockSpec((1, H1), lambda b, t: (0, 0)),
            pl.BlockSpec((H1, NC), lambda b, t: (0, 0)),
            pl.BlockSpec((1, NC), lambda b, t: (0, 0)),
        ],
        out_specs=pl.BlockSpec((1, 1, NC), lambda b, t: (b, 0, 0)),
        scratch_shapes=[pltpu.VMEM((C, HW), jnp.float32)],
    )

    # Advisory cost estimate: this kernel is memory-bound on the input read.
    flops = B * T * C * HW + B * (2 * C * H1 + 2 * H1 * NC)
    bytes_accessed = (B * T * C * HW) * x.dtype.itemsize + \
                     (C * H1 + H1 + H1 * NC + NC + B * NC) * 4

    out = pl.pallas_call(
        kernel,
        out_shape=jax.ShapeDtypeStruct((B, 1, NC), jnp.float32),
        grid_spec=grid_spec,
        compiler_params=pltpu.CompilerParams(
            dimension_semantics=("parallel", "arbitrary"),
            vmem_limit_bytes=32 * 1024 * 1024,
        ),
        cost_estimate=pl.CostEstimate(flops=flops, transcendentals=0,
                                      bytes_accessed=bytes_accessed),
    )(feats, w1, b1r, w2, b2r)

    return out.reshape(B, NC)


if __name__ == "__main__":
    # Small, deterministic configuration consistent with the module.
    batch = 2
    tuple_len = 4                  # -> num_classes = 4! = 24
    feature_size = 32              # channel dim of the (identity) base features
    frames, height, width = 4, 8, 8
    hidden = 1024                  # nn.Linear(feature_size, 1024)
    num_classes = math.factorial(tuple_len)

    key = jax.random.PRNGKey(0)
    kx, k1, k2, k3, k4 = jax.random.split(key, 5)

    # Input follows the PyTorch forward convention: (B, T, C, H, W).
    x = jax.random.normal(kx, (batch, frames, feature_size, height, width),
                          dtype=jnp.float32)

    # Deterministic parameter init (shapes from the module's __init__).
    w1 = jax.random.normal(k1, (feature_size, hidden), dtype=jnp.float32) * 0.02
    b1 = jax.random.normal(k2, (1, hidden), dtype=jnp.float32) * 0.02
    w2 = jax.random.normal(k3, (hidden, num_classes), dtype=jnp.float32) * 0.02
    b2 = jax.random.normal(k4, (1, num_classes), dtype=jnp.float32) * 0.02

    out = jax.block_until_ready(vcopn_forward(x, w1, b1, w2, b2))

    # Pure-JAX reference (same semantics as the PyTorch forward, identity base).
    pooled_ref = x.mean(axis=(1, 3, 4))                 # == permute + AvgPool3d(1)
    ref = jnp.maximum(pooled_ref @ w1 + b1, 0.0) @ w2 + b2

    assert out.shape == (batch, num_classes)
    assert jnp.allclose(out, ref, atol=1e-4, rtol=1e-4)
    print("KERNEL_OK")
</pallas_src>

<mosaic_0001>
module attributes {stable_mosaic.version = 11 : i64} {
  func.func @vcopn_kernel(%arg0: i32, %arg1: i32, %arg2: memref<1x4x32x64xf32, #tpu.memory_space<vmem>>, %arg3: memref<32x1024xf32, #tpu.memory_space<vmem>>, %arg4: memref<1x1024xf32, #tpu.memory_space<vmem>>, %arg5: memref<1024x24xf32, #tpu.memory_space<vmem>>, %arg6: memref<1x24xf32, #tpu.memory_space<vmem>>, %arg7: memref<1x1x24xf32, #tpu.memory_space<vmem>>, %arg8: memref<32x64xf32, #tpu.memory_space<vmem>>) attributes {dimension_semantics = [#tpu.dimension_semantics<parallel>, #tpu.dimension_semantics<arbitrary>], iteration_bounds = array<i64: 2, 1>, scalar_prefetch = 0 : i64, scratch_operands = 1 : i64, tpu.core_type = #tpu.core_type<tc>, window_params = [{transform_indices = @transform_0, window_bounds = array<i64: 1, 4, 32, 64>}, {pipeline_mode = #tpu.pipeline_mode<synchronous>, transform_indices = @transform_1, window_bounds = array<i64: 32, 1024>}, {pipeline_mode = #tpu.pipeline_mode<synchronous>, transform_indices = @transform_2, window_bounds = array<i64: 1, 1024>}, {pipeline_mode = #tpu.pipeline_mode<synchronous>, transform_indices = @transform_3, window_bounds = array<i64: 1024, 24>}, {pipeline_mode = #tpu.pipeline_mode<synchronous>, transform_indices = @transform_4, window_bounds = array<i64: 1, 24>}, {transform_indices = @transform_5, window_bounds = array<i64: 1, 1, 24>}]} {
    %c0_i32 = arith.constant 0 : i32
    %0 = arith.cmpi eq, %arg1, %c0_i32 : i32
    %1 = arith.extui %0 : i1 to i32
    %c0_i32_0 = arith.constant 0 : i32
    %2 = arith.cmpi ne, %1, %c0_i32_0 : i32
    scf.if %2 {
      %cst_10 = arith.constant 0.000000e+00 : f32
      %12 = vector.broadcast %cst_10 : f32 to vector<32x64xf32>
      %c0_11 = arith.constant 0 : index
      %c0_12 = arith.constant 0 : index
      %13 = vector.load %arg8[%c0_11, %c0_12] : memref<32x64xf32, #tpu.memory_space<vmem>>, vector<32x64xf32>
      tpu.vector_store %arg8[%c0_11, %c0_12], %12 {strides = array<i32>} : memref<32x64xf32, #tpu.memory_space<vmem>>, vector<32x64xf32>,
    } else {
    }
    %c0 = arith.constant 0 : index
    %c0_1 = arith.constant 0 : index
    %c0_2 = arith.constant 0 : index
    %c0_3 = arith.constant 0 : index
    %3 = vector.load %arg2[%c0, %c0_1, %c0_2, %c0_3] : memref<1x4x32x64xf32, #tpu.memory_space<vmem>>, vector<1x4x32x64xf32>
    %4 = vector.shape_cast %3 : vector<1x4x32x64xf32> to vector<4x32x64xf32>
    %c0_4 = arith.constant 0 : index
    %c0_5 = arith.constant 0 : index
    %5 = vector.load %arg8[%c0_4, %c0_5] : memref<32x64xf32, #tpu.memory_space<vmem>>, vector<32x64xf32>
    %cst = arith.constant dense<0.000000e+00> : vector<32x64xf32>
    %6 = vector.multi_reduction <add>, %4, %cst [0] : vector<4x32x64xf32> to vector<32x64xf32>
    %7 = arith.addf %5, %6 : vector<32x64xf32>
    %c0_6 = arith.constant 0 : index
    %c0_7 = arith.constant 0 : index
    %8 = vector.load %arg8[%c0_6, %c0_7] : memref<32x64xf32, #tpu.memory_space<vmem>>, vector<32x64xf32>
    tpu.vector_store %arg8[%c0_6, %c0_7], %7 {strides = array<i32>} : memref<32x64xf32, #tpu.memory_space<vmem>>, vector<32x64xf32>,
    %c0_i32_8 = arith.constant 0 : i32
    %9 = arith.cmpi eq, %arg1, %c0_i32_8 : i32
    %10 = arith.extui %9 : i1 to i32
    %c0_i32_9 = arith.constant 0 : i32
    %11 = arith.cmpi ne, %10, %c0_i32_9 : i32
    scf.if %11 {
      %c0_10 = arith.constant 0 : index
      %c0_11 = arith.constant 0 : index
      %12 = vector.load %arg8[%c0_10, %c0_11] : memref<32x64xf32, #tpu.memory_space<vmem>>, vector<32x64xf32>
      %cst_12 = arith.constant dense<0.000000e+00> : vector<32xf32>
      %13 = vector.multi_reduction <add>, %12, %cst_12 [1] : vector<32x64xf32> to vector<32xf32>
      %14 = vector.shape_cast %13 : vector<32xf32> to vector<32x1xf32>
      %cst_13 = arith.constant 3.906250e-03 : f32
      %15 = vector.broadcast %cst_13 : f32 to vector<32x1xf32>
      %16 = arith.mulf %14, %15 : vector<32x1xf32>
      %c0_14 = arith.constant 0 : index
      %c0_15 = arith.constant 0 : index
      %17 = vector.load %arg3[%c0_14, %c0_15] : memref<32x1024xf32, #tpu.memory_space<vmem>>, vector<32x1024xf32>
      %18 = vector.broadcast %16 : vector<32x1xf32> to vector<32x1024xf32>
      %19 = arith.mulf %18, %17 : vector<32x1024xf32>
      %cst_16 = arith.constant dense<0.000000e+00> : vector<1024xf32>
      %20 = vector.multi_reduction <add>, %19, %cst_16 [0] : vector<32x1024xf32> to vector<1024xf32>
      %21 = vector.shape_cast %20 : vector<1024xf32> to vector<1x1024xf32>
      %c0_17 = arith.constant 0 : index
      %c0_18 = arith.constant 0 : index
      %22 = vector.load %arg4[%c0_17, %c0_18] : memref<1x1024xf32, #tpu.memory_space<vmem>>, vector<1x1024xf32>
      %23 = arith.addf %21, %22 : vector<1x1024xf32>
      %cst_19 = arith.constant 0.000000e+00 : f32
      %24 = vector.broadcast %cst_19 : f32 to vector<1x1024xf32>
      %25 = arith.maximumf %23, %24 : vector<1x1024xf32>
      %c0_20 = arith.constant 0 : index
      %c0_21 = arith.constant 0 : index
      %26 = vector.load %arg5[%c0_20, %c0_21] : memref<1024x24xf32, #tpu.memory_space<vmem>>, vector<1024x24xf32>
      %cst_22 = arith.constant dense<0.000000e+00> : vector<1x24xf32>
      %27 = tpu.matmul %25, %26, %cst_22 {dimension_numbers = #tpu.dot_dimension_numbers<[1], [0], [0], [1], [0, 0, 1, 1], [], []>} : vector<1x1024xf32>, vector<1024x24xf32>, vector<1x24xf32> -> vector<1x24xf32>
      %c0_23 = arith.constant 0 : index
      %c0_24 = arith.constant 0 : index
      %28 = vector.load %arg6[%c0_23, %c0_24] : memref<1x24xf32, #tpu.memory_space<vmem>>, vector<1x24xf32>
      %29 = arith.addf %27, %28 : vector<1x24xf32>
      %c0_25 = arith.constant 0 : index
      %c0_26 = arith.constant 0 : index
      %c0_27 = arith.constant 0 : index
      %30 = vector.load %arg7[%c0_25, %c0_26, %c0_27] : memref<1x1x24xf32, #tpu.memory_space<vmem>>, vector<1x1x24xf32>
      %31 = vector.shape_cast %30 : vector<1x1x24xf32> to vector<1x24xf32>
      %32 = vector.shape_cast %29 : vector<1x24xf32> to vector<1x1x24xf32>
      tpu.vector_store %arg7[%c0_25, %c0_26, %c0_27], %32 {strides = array<i32>} : memref<1x1x24xf32, #tpu.memory_space<vmem>>, vector<1x1x24xf32>,
    } else {
    }
    return
  }
  func.func @transform_0(%arg0: i32, %arg1: i32) -> (i32, i32, i32, i32) {
    %c0_i32 = arith.constant 0 : i32
    %c0_i32_0 = arith.constant 0 : i32
    %c0_i32_1 = arith.constant 0 : i32
    return %arg0, %arg1, %c0_i32, %c0_i32_0 : i32, i32, i32, i32
  }
  func.func @transform_1(%arg0: i32, %arg1: i32) -> (i32, i32) {
    %c0_i32 = arith.constant 0 : i32
    %c0_i32_0 = arith.constant 0 : i32
    %c0_i32_1 = arith.constant 0 : i32
    return %c0_i32, %c0_i32_0 : i32, i32
  }
  func.func @transform_2(%arg0: i32, %arg1: i32) -> (i32, i32) {
    %c0_i32 = arith.constant 0 : i32
    %c0_i32_0 = arith.constant 0 : i32
    %c0_i32_1 = arith.constant 0 : i32
    return %c0_i32, %c0_i32_0 : i32, i32
  }
  func.func @transform_3(%arg0: i32, %arg1: i32) -> (i32, i32) {
    %c0_i32 = arith.constant 0 : i32
    %c0_i32_0 = arith.constant 0 : i32
    %c0_i32_1 = arith.constant 0 : i32
    return %c0_i32, %c0_i32_0 : i32, i32
  }
  func.func @transform_4(%arg0: i32, %arg1: i32) -> (i32, i32) {
    %c0_i32 = arith.constant 0 : i32
    %c0_i32_0 = arith.constant 0 : i32
    %c0_i32_1 = arith.constant 0 : i32
    return %c0_i32, %c0_i32_0 : i32, i32
  }
  func.func @transform_5(%arg0: i32, %arg1: i32) -> (i32, i32, i32) {
    %c0_i32 = arith.constant 0 : i32
    %c0_i32_0 = arith.constant 0 : i32
    %c0_i32_1 = arith.constant 0 : i32
    return %arg0, %c0_i32, %c0_i32_0 : i32, i32, i32
  }
}

</mosaic_0001>

<bundles_post_ra>
// kernel: tpu_custom_call.1
= control target key start
LH: loop header
LB: loop body
LE: loop exit
PB: predicated region body
PF: predicated region fallthrough
CT: control target
= control target key end

     0   :  { %10 = vsyncpa [#allocation4], 0  ;;  %s1751_s0 = inlined_call_operand.vmem [shape: f32[2,4,32,64], index: 0, kind: input, shape index: {}]   ;;  %s1752_s1 = inlined_call_operand.vmem [shape: f32[32,1024], index: 1, kind: input, shape index: {}]   ;;  %s1753_s2 = inlined_call_operand.vmem [shape: f32[1,1024], index: 2, kind: input, shape index: {}]   ;;  %s1754_s3 = inlined_call_operand.vmem [shape: f32[1024,24], index: 3, kind: input, shape index: {}]   ;;  %s1755_s4 = inlined_call_operand.vmem [shape: f32[1,24], index: 4, kind: input, shape index: {}]   ;;  %s1756_s5 = inlined_call_operand.hbm [shape: f32[2,1,24], index: 5, kind: output, shape index: {}]  }
   0x1   :  { %12 = vsyncpa [#allocation4 + $0x1], 0  ;;  %s1065_s18 = smov 0   ;;  %s1067_s19 = smov 0  }
   0x2   :  { %s1069_s20 = smov 0   ;;  %s1071_s21 = smov 0  }
   0x3   :  { %s1073_s22 = smov 0   ;;  %s1075_s23 = smov 0  }
   0x4 LB: > { %s888_s24 = sadd.s32 4294967295, %s1032_s23   ;;  %s889_s25 = sadd.s32 4294967294, %s1032_s23   ;;  %s1032_s23 = sphi %s1075_s23, %s18_s23   ;;  %s1028_s22 = sphi %s1073_s22, %s1763_s22   ;;  %s1024_s21 = sphi %s1071_s21, %s1762_s21   ;;  %s1020_s20 = sphi %s1069_s20, %s1761_s20   ;;  %s1016_s19 = sphi %s1067_s19, %s1760_s19   ;;  %s1012_s18 = sphi %s1065_s18, %s1759_s18  }
   0x5   : > { %s30_s26 = sadd.s32 1, %s1028_s22  ;;  %s149_s27 = sadd.s32 1, %s1020_s20 }
   0x6   : > { %p32_p0 = scmp.ge.s32.totalorder %s30_s26, 2  ;;  %p159_p1 = scmp.ne.s32.totalorder %s1020_s20, %s1016_s19 }
   0x7   : > { %p160_p2 = scmp.eq.s32.totalorder %s888_s24, 1  ;;  %p165_p3 = scmp.ne.s32.totalorder %s1016_s19, %s1012_s18 }
   0x8   : > { %s1765_s26 = smov (%p32_p0, %s30_s26), 0  ;;  %p166_p5 = scmp.eq.s32.totalorder %s889_s25, 1 }
   0x9   : > { %p1105_p4 = por %p160_p2, %p159_p1  ;;  %s146_s29 = ssub.s32 %s1028_s22, %s1765_s26 }
   0xa   : > { %p892_p6 = scmp.ge.s32.totalorder %s1032_s23, 1  ;;  %p147_p7 = scmp.eq.s32.totalorder %s146_s29, 0 }
   0xb   : > { %p1112_p8 = por %p166_p5, %p165_p3  ;;  %p210_p9 = scmp.lt.s32.totalorder %s1032_s23, 3 }
   0xc   : > { %s1118_s6 = scalar_select %p147_p7, %s1020_s20, %s149_s27  }
   0xd   : > { %p211_p10 = pnand %p892_p6, %p210_p9 }
   0xe   : > { %p243_p11 = scmp.lt.s32.totalorder (!%p211_p10), %s1024_s21, 1  ;;  %s812_s10 = scalar_lea.hbm (!%p211_p10), %s1756_s5, %s1024_s21 }
   0xf   : > { %214 = sbr.rel (%p211_p10) target bundleno = 342 (0x156), region = 40  ;;  %s816_s13 = sshll.u32 (!%p211_p10), %s812_s10, 4  ;;  %s817_s13 = int_to_ptr.hbm [resolvable:$true] %s816_s13 }
  0x10   : > { %s974_s17 = scalar_lea.hbm (!%p211_p10), %s1756_s5, 2 }
  0x14   : > { %vm257_vm0 = vcmask 523264   ;;  %v1034_v0 = vmov 0.0   ;;  %s244_s7 = scalar_select %p243_p11, %s1024_s21, 1  ;;  %v527_v1 = vld [vmem:[%s1754_s3 + $0x78] sm:$0xff]  ;;  %v526_v5 = vld [vmem:[%s1754_s3 + $0x70] sm:$0xff]  ;;  %v525_v9 = vld [vmem:[%s1754_s3 + $0x68] sm:$0xff] }
  0x15   : > { %258 = vst.msk [vmem:[#allocation2] sm:$0xff] %vm257_vm0, %v1034_v0  ;;  %v543_v2 = vld [vmem:[%s1754_s3 + $0xf8] sm:$0xff]  ;;  %641 = vmatpush.msra.mxu0 %v527_v1  ;;  %v542_v6 = vld [vmem:[%s1754_s3 + $0xf0] sm:$0xff]  ;;  %v541_v10 = vld [vmem:[%s1754_s3 + $0xe8] sm:$0xff]  ;;  %vm801_vm1 = vcmask 188416  }
  0x16   : > { %259 = vst.msk [vmem:[#allocation2 + $0x8] sm:$0xff] %vm257_vm0, %v1034_v0  ;;  %v559_v3 = vld [vmem:[%s1754_s3 + $0x178] sm:$0xff]  ;;  %661 = vmatpush.msra.mxu1 %v543_v2  ;;  %s897_s27 = sshll.u32 %s244_s7, 7  ;;  %v558_v7 = vld [vmem:[%s1754_s3 + $0x170] sm:$0xff]  ;;  %v557_v11 = vld [vmem:[%s1754_s3 + $0x168] sm:$0xff] }
  0x17   : > { %260 = vst.msk [vmem:[#allocation2 + $0x10] sm:$0xff] %vm257_vm0, %v1034_v0  ;;  %v575_v4 = vld [vmem:[%s1754_s3 + $0x1f8] sm:$0xff]  ;;  %681 = vmatpush.msra.mxu2 %v559_v3  ;;  %v574_v8 = vld [vmem:[%s1754_s3 + $0x1f0] sm:$0xff]  ;;  %s1156_s7 = scalar_lea.vmem %s1751_s0, %s897_s27  ;;  %642 = vmatpush.msra.mxu0 %v526_v5  ;;  %v573_v12 = vld [vmem:[%s1754_s3 + $0x1e8] sm:$0xff]  ;;  %s240_s27 = sand.u32 1, %s1016_s19  }
  0x18   : > { %261 = vst.msk [vmem:[#allocation2 + $0x18] sm:$0xff] %vm257_vm0, %v1034_v0  ;;  %701 = vmatpush.msra.mxu3 %v575_v4  ;;  %662 = vmatpush.msra.mxu1 %v542_v6  ;;  %v262_v13 = vld [vmem:[%s1156_s7] sm:$0xff]  ;;  %v264_v20 = vld [vmem:[%s1156_s7 + $0x10] sm:$0xff]  ;;  %v263_v31 = vld [vmem:[%s1156_s7 + $0x8] sm:$0xff]  ;;  %s241_s11 = scalar_lea.vmem [#allocation3], %s240_s27  ;;  %s804_s14 = scalar_lea.sflag [#allocation4], %s240_s27 }
  0x19   : > { %v266_v14 = vld [vmem:[%s1156_s7 + $0x20] sm:$0xff]  ;;  %682 = vmatpush.msra.mxu2 %v558_v7  ;;  %v283_v17 = vsel %vm257_vm0, %v262_v13, 0.0  ;;  %v268_v21 = vld [vmem:[%s1156_s7 + $0x30] sm:$0xff]  ;;  %643 = vmatpush.msra.mxu0 %v525_v9  ;;  %v297_v25 = vsel %vm257_vm0, %v264_v20, 0.0  ;;  %v267_v32 = vld [vmem:[%s1156_s7 + $0x28] sm:$0xff]  ;;  %v290_v38 = vsel %vm257_vm0, %v263_v31, 0.0 }
  0x1a   : > { %v270_v15 = vld [vmem:[%s1156_s7 + $0x40] sm:$0xff]  ;;  %702 = vmatpush.msra.mxu3 %v574_v8  ;;  %v284_v18 = vsel %vm257_vm0, %v266_v14, 0.0  ;;  %663 = vmatpush.msra.mxu1 %v541_v10  ;;  %v272_v23 = vld [vmem:[%s1156_s7 + $0x50] sm:$0xff]  ;;  %v298_v26 = vsel %vm257_vm0, %v268_v21, 0.0  ;;  %v271_v33 = vld [vmem:[%s1156_s7 + $0x48] sm:$0xff]  ;;  %v291_v39 = vsel %vm257_vm0, %v267_v32, 0.0 }
  0x1b   : > { %v274_v16 = vld [vmem:[%s1156_s7 + $0x60] sm:$0xff]  ;;  %v286_v19 = vsel %vm257_vm0, %v270_v15, 0.0  ;;  %v285_v22 = vadd.f32 %v284_v18, %v283_v17  ;;  %v276_v24 = vld [vmem:[%s1156_s7 + $0x70] sm:$0xff]  ;;  %683 = vmatpush.msra.mxu2 %v557_v11  ;;  %v299_v28 = vadd.f32 %v298_v26, %v297_v25  ;;  %v300_v29 = vsel %vm257_vm0, %v272_v23, 0.0  ;;  %v275_v37 = vld [vmem:[%s1156_s7 + $0x68] sm:$0xff]  ;;  %s814_s12 = sshll.u32 %s241_s11, 4  ;;  %s815_s12 = int_to_ptr.vmem [resolvable:$true] %s814_s12 }
  0x1c   : > { %703 = vmatpush.msra.mxu3 %v573_v12  ;;  %v288_v27 = vsel %vm257_vm0, %v274_v16, 0.0  ;;  %v302_v30 = vsel %vm257_vm0, %v276_v24, 0.0  ;;  %v278_v34 = vld [vmem:[#allocation2] sm:$0xff]  ;;  %v293_v40 = vsel %vm257_vm0, %v271_v33, 0.0  ;;  %v292_v42 = vadd.f32 %v291_v39, %v290_v38  ;;  %v265_v44 = vld [vmem:[%s1156_s7 + $0x18] sm:$0xff]  ;;  %v522_v6 = vld [vmem:[%s1754_s3 + $0x50] sm:$0xff] }
  0x1d   : > { %v287_v35 = vadd.f32 %v286_v19, %v285_v22  ;;  %v301_v41 = vadd.f32 %v300_v29, %v299_v28  ;;  %v295_v43 = vsel %vm257_vm0, %v275_v37, 0.0  ;;  %v269_v45 = vld [vmem:[%s1156_s7 + $0x38] sm:$0xff]  ;;  %v279_v48 = vld [vmem:[#allocation2 + $0x8] sm:$0xff]  ;;  %v304_v50 = vsel %vm257_vm0, %v265_v44, 0.0  ;;  %v524_v53 = vld [vmem:[%s1754_s3 + $0x60] sm:$0xff] }
  0x1e   : > { %v280_v36 = vld [vmem:[#allocation2 + $0x10] sm:$0xff]  ;;  %v273_v46 = vld [vmem:[%s1156_s7 + $0x58] sm:$0xff]  ;;  %v305_v51 = vsel %vm257_vm0, %v269_v45, 0.0  ;;  %v294_v55 = vadd.f32 %v293_v40, %v292_v42  ;;  %644 = vmatpush.msra.mxu0 %v524_v53  ;;  %v540_v57 = vld [vmem:[%s1754_s3 + $0xe0] sm:$0xff] }
  0x1f   : > { %v289_v47 = vadd.f32 %v288_v27, %v287_v35  ;;  %v277_v49 = vld [vmem:[%s1156_s7 + $0x78] sm:$0xff]  ;;  %v307_v52 = vsel %vm257_vm0, %v273_v46, 0.0  ;;  %v303_v54 = vadd.f32 %v302_v30, %v301_v41  ;;  %v306_v56 = vadd.f32 %v305_v51, %v304_v50  ;;  %v556_v58 = vld [vmem:[%s1754_s3 + $0x160] sm:$0xff]  ;;  %664 = vmatpush.msra.mxu1 %v540_v57  ;;  %v538_v7 = vld [vmem:[%s1754_s3 + $0xd0] sm:$0xff]  ;;  %s968_s7 = sshra.s32 %s817_s13, 4  ;;  %s969_s7 = int_to_ptr.hbm [resolvable:$true] %s968_s7 }
  0x20   : > { %v572_v59 = vld [vmem:[%s1754_s3 + $0x1e0] sm:$0xff]  ;;  %v281_v61 = vld [vmem:[#allocation2 + $0x18] sm:$0xff]  ;;  %v309_v62 = vsel %vm257_vm0, %v277_v49, 0.0  ;;  %684 = vmatpush.msra.mxu2 %v556_v58  ;;  %v296_v3 = vadd.f32 %v295_v43, %v294_v55  ;;  %v554_v8 = vld [vmem:[%s1754_s3 + $0x150] sm:$0xff]  ;;  %s970_s15 = scalar_lea.hbm %s969_s7, 1  ;;  %p975_p1 = scmp.lt.s32.totalorder %s969_s7, %s1756_s5 }
  0x21   : > { %v311_v60 = vadd.f32 %v289_v47, %v278_v34  ;;  %v523_v63 = vld [vmem:[%s1754_s3 + $0x58] sm:$0xff]  ;;  %v313_v2 = vadd.f32 %v303_v54, %v280_v36  ;;  %v308_v4 = vadd.f32 %v307_v52, %v306_v56  ;;  %704 = vmatpush.msra.mxu3 %v572_v59  ;;  %v570_v9 = vld [vmem:[%s1754_s3 + $0x1d0] sm:$0xff]  ;;  %v521_v10 = vld [vmem:[%s1754_s3 + $0x48] sm:$0xff]  ;;  %p971_p12 = scmp.ne.s32.totalorder %s969_s7, %s970_s15  ;;  %p976_p2 = scmp.lt.s32.totalorder %s974_s17, %s970_s15 }
  0x22   : > { %v539_v0 = vld [vmem:[%s1754_s3 + $0xd8] sm:$0xff]  ;;  %645 = vmatpush.msra.mxu0 %v523_v63  ;;  %v312_v11 = vadd.f32 %v296_v3, %v279_v48  ;;  %v537_v13 = vld [vmem:[%s1754_s3 + $0xc8] sm:$0xff]  ;;  %v520_v16 = vld [vmem:[%s1754_s3 + $0x40] sm:$0xff] }
  0x23   : > { %v555_v1 = vld [vmem:[%s1754_s3 + $0x158] sm:$0xff]  ;;  %315 = vst.msk [vmem:[#allocation2] sm:$0xff] %vm257_vm0, %v311_v60  ;;  %665 = vmatpush.msra.mxu1 %v539_v0  ;;  %v310_v12 = vadd.f32 %v309_v62, %v308_v4  ;;  %v553_v14 = vld [vmem:[%s1754_s3 + $0x148] sm:$0xff]  ;;  %v536_v18 = vld [vmem:[%s1754_s3 + $0xc0] sm:$0xff]  ;;  %p972_p13 = pnand %p971_p12, %p1105_p4  ;;  %p977_p3 = por %p976_p2, %p975_p1 }
  0x24   : > { %v571_v5 = vld [vmem:[%s1754_s3 + $0x1d8] sm:$0xff]  ;;  %685 = vmatpush.msra.mxu2 %v555_v1  ;;  %317 = vst.msk [vmem:[#allocation2 + $0x10] sm:$0xff] %vm257_vm0, %v313_v2  ;;  %646 = vmatpush.msra.mxu0 %v522_v6  ;;  %v569_v15 = vld [vmem:[%s1754_s3 + $0x1c8] sm:$0xff]  ;;  %v552_v19 = vld [vmem:[%s1754_s3 + $0x140] sm:$0xff] }
  0x25   : > { %705 = vmatpush.msra.mxu3 %v571_v5  ;;  %666 = vmatpush.msra.mxu1 %v538_v7  ;;  %316 = vst.msk [vmem:[#allocation2 + $0x8] sm:$0xff] %vm257_vm0, %v312_v11  ;;  %v314_v17 = vadd.f32 %v310_v12, %v281_v61  ;;  %v568_v20 = vld [vmem:[%s1754_s3 + $0x1c0] sm:$0xff]  ;;  %v519_v21 = vld [vmem:[%s1754_s3 + $0x38] sm:$0xff]  ;;  %v518_v26 = vld [vmem:[%s1754_s3 + $0x30] sm:$0xff]  ;;  %p973_p0 = pneg %p972_p13 }
  0x26   : > { %686 = vmatpush.msra.mxu2 %v554_v8  ;;  %647 = vmatpush.msra.mxu0 %v521_v10  ;;  %v535_v22 = vld [vmem:[%s1754_s3 + $0xb8] sm:$0xff]  ;;  %v534_v29 = vld [vmem:[%s1754_s3 + $0xb0] sm:$0xff]  ;;  %v517_v37 = vld [vmem:[%s1754_s3 + $0x28] sm:$0xff] }
  0x27   : > { %706 = vmatpush.msra.mxu3 %v570_v9  ;;  %667 = vmatpush.msra.mxu1 %v537_v13  ;;  %318 = vst.msk [vmem:[#allocation2 + $0x18] sm:$0xff] %vm257_vm0, %v314_v17  ;;  %v551_v23 = vld [vmem:[%s1754_s3 + $0x138] sm:$0xff]  ;;  %v550_v30 = vld [vmem:[%s1754_s3 + $0x130] sm:$0xff]  ;;  %v533_v38 = vld [vmem:[%s1754_s3 + $0xa8] sm:$0xff]  ;;  %p978_p5 = pnand %p977_p3, %p973_p0 }
  0x28   : > { %687 = vmatpush.msra.mxu2 %v553_v14  ;;  %648 = vmatpush.msra.mxu0 %v520_v16  ;;  %v567_v24 = vld [vmem:[%s1754_s3 + $0x1b8] sm:$0xff]  ;;  %v566_v32 = vld [vmem:[%s1754_s3 + $0x1b0] sm:$0xff]  ;;  %v549_v39 = vld [vmem:[%s1754_s3 + $0x128] sm:$0xff] }
  0x29   : > { %707 = vmatpush.msra.mxu3 %v569_v15  ;;  %668 = vmatpush.msra.mxu1 %v536_v18  ;;  %v565_v40 = vld [vmem:[%s1754_s3 + $0x1a8] sm:$0xff]  ;;  %v516_v41 = vld [vmem:[%s1754_s3 + $0x20] sm:$0xff]  ;;  %v515_v45 = vld [vmem:[%s1754_s3 + $0x18] sm:$0xff] }
  0x2a   : > { %688 = vmatpush.msra.mxu2 %v552_v19  ;;  %v322_v25 = vld [vmem:[#allocation2] sm:$0xff]  ;;  %649 = vmatpush.msra.mxu0 %v519_v21  ;;  %v531_v46 = vld [vmem:[%s1754_s3 + $0x98] sm:$0xff]  ;;  %v514_v49 = vld [vmem:[%s1754_s3 + $0x10] sm:$0xff] }
  0x2b   : > { %708 = vmatpush.msra.mxu3 %v568_v20  ;;  %v326_v27 = vsel %vm257_vm0, %v322_v25, 0.0  ;;  %v324_v28 = vld [vmem:[#allocation2 + $0x10] sm:$0xff]  ;;  %669 = vmatpush.msra.mxu1 %v535_v22  ;;  %v532_v42 = vld [vmem:[%s1754_s3 + $0xa0] sm:$0xff]  ;;  %v547_v47 = vld [vmem:[%s1754_s3 + $0x118] sm:$0xff] }
  0x2c   : > { %689 = vmatpush.msra.mxu2 %v551_v23  ;;  %327 = vadd.xlane.f32.xlu0 %v326_v27  ;;  %v332_v31 = vsel %vm257_vm0, %v324_v28, 0.0  ;;  %v323_v33 = vld [vmem:[#allocation2 + $0x8] sm:$0xff]  ;;  %v548_v43 = vld [vmem:[%s1754_s3 + $0x120] sm:$0xff]  ;;  %v563_v48 = vld [vmem:[%s1754_s3 + $0x198] sm:$0xff] }
  0x2d   : > { %709 = vmatpush.msra.mxu3 %v567_v24  ;;  %333 = vadd.xlane.f32.xlu1 %v332_v31  ;;  %v329_v35 = vsel %vm257_vm0, %v323_v33, 0.0  ;;  %v564_v44 = vld [vmem:[%s1754_s3 + $0x1a0] sm:$0xff]  ;;  %v530_v50 = vld [vmem:[%s1754_s3 + $0x90] sm:$0xff]  ;;  %v513_v53 = vld [vmem:[%s1754_s3 + $0x8] sm:$0xff] }
  0x2e   : > { %650 = vmatpush.msra.mxu0 %v518_v26  ;;  %670 = vmatpush.msra.mxu1 %v534_v29  ;;  %v325_v34 = vld [vmem:[#allocation2 + $0x18] sm:$0xff]  ;;  %v546_v51 = vld [vmem:[%s1754_s3 + $0x110] sm:$0xff]  ;;  %v529_v54 = vld [vmem:[%s1754_s3 + $0x88] sm:$0xff] }
  0x2f   : > { %690 = vmatpush.msra.mxu2 %v550_v30  ;;  %710 = vmatpush.msra.mxu3 %v566_v32  ;;  %v335_v36 = vsel %vm257_vm0, %v325_v34, 0.0  ;;  %v562_v52 = vld [vmem:[%s1754_s3 + $0x190] sm:$0xff]  ;;  %v545_v55 = vld [vmem:[%s1754_s3 + $0x108] sm:$0xff]  ;;  %v512_v57 = vld [vmem:[%s1754_s3] sm:$0xff] }
  0x30   : > { %651 = vmatpush.msra.mxu0 %v517_v37  ;;  %671 = vmatpush.msra.mxu1 %v533_v38  ;;  %v561_v56 = vld [vmem:[%s1754_s3 + $0x188] sm:$0xff]  ;;  %v528_v58 = vld [vmem:[%s1754_s3 + $0x80] sm:$0xff]  ;;  %v591_v61 = vld [vmem:[%s1754_s3 + $0x278] sm:$0xff] }
  0x31   : > { %691 = vmatpush.msra.mxu2 %v549_v39  ;;  %711 = vmatpush.msra.mxu3 %v565_v40  ;;  %v544_v59 = vld [vmem:[%s1754_s3 + $0x100] sm:$0xff]  ;;  %v607_v62 = vld [vmem:[%s1754_s3 + $0x2f8] sm:$0xff]  ;;  %v590_v1 = vld [vmem:[%s1754_s3 + $0x270] sm:$0xff] }
  0x32   : > { %652 = vmatpush.msra.mxu0 %v516_v41  ;;  %672 = vmatpush.msra.mxu1 %v532_v42  ;;  %v560_v60 = vld [vmem:[%s1754_s3 + $0x180] sm:$0xff]  ;;  %v623_v63 = vld [vmem:[%s1754_s3 + $0x378] sm:$0xff]  ;;  %v606_v2 = vld [vmem:[%s1754_s3 + $0x2f0] sm:$0xff] }
  0x33   : > { %692 = vmatpush.msra.mxu2 %v548_v43  ;;  %712 = vmatpush.msra.mxu3 %v564_v44  ;;  %v639_v0 = vld [vmem:[%s1754_s3 + $0x3f8] sm:$0xff]  ;;  %v622_v3 = vld [vmem:[%s1754_s3 + $0x370] sm:$0xff]  ;;  %v589_v5 = vld [vmem:[%s1754_s3 + $0x268] sm:$0xff] }
  0x34   : > { %330 = vadd.xlane.f32.xlu0 %v329_v35  ;;  %653 = vmatpush.msra.mxu0 %v515_v45  ;;  %v638_v4 = vld [vmem:[%s1754_s3 + $0x3f0] sm:$0xff]  ;;  %v605_v6 = vld [vmem:[%s1754_s3 + $0x2e8] sm:$0xff]  ;;  %v588_v9 = vld [vmem:[%s1754_s3 + $0x260] sm:$0xff] }
  0x35   : > { %336 = vadd.xlane.f32.xlu1 %v335_v36  ;;  %673 = vmatpush.msra.mxu1 %v531_v46  ;;  %v621_v7 = vld [vmem:[%s1754_s3 + $0x368] sm:$0xff]  ;;  %v604_v10 = vld [vmem:[%s1754_s3 + $0x2e0] sm:$0xff]  ;;  %v587_v13 = vld [vmem:[%s1754_s3 + $0x258] sm:$0xff] }
  0x36   : > { %693 = vmatpush.msra.mxu2 %v547_v47  ;;  %713 = vmatpush.msra.mxu3 %v563_v48  ;;  %v637_v8 = vld [vmem:[%s1754_s3 + $0x3e8] sm:$0xff]  ;;  %v620_v11 = vld [vmem:[%s1754_s3 + $0x360] sm:$0xff]  ;;  %v603_v14 = vld [vmem:[%s1754_s3 + $0x2d8] sm:$0xff] }
  0x37   : > { %654 = vmatpush.msra.mxu0 %v514_v49  ;;  %674 = vmatpush.msra.mxu1 %v530_v50  ;;  %v636_v12 = vld [vmem:[%s1754_s3 + $0x3e0] sm:$0xff]  ;;  %v619_v15 = vld [vmem:[%s1754_s3 + $0x358] sm:$0xff]  ;;  %v586_v17 = vld [vmem:[%s1754_s3 + $0x250] sm:$0xff] }
  0x38   : > { %694 = vmatpush.msra.mxu2 %v546_v51  ;;  %714 = vmatpush.msra.mxu3 %v562_v52  ;;  %v635_v16 = vld [vmem:[%s1754_s3 + $0x3d8] sm:$0xff]  ;;  %v602_v18 = vld [vmem:[%s1754_s3 + $0x2d0] sm:$0xff]  ;;  %v585_v21 = vld [vmem:[%s1754_s3 + $0x248] sm:$0xff] }
  0x39   : > { %655 = vmatpush.msra.mxu0 %v513_v53  ;;  %675 = vmatpush.msra.mxu1 %v529_v54  ;;  %v618_v19 = vld [vmem:[%s1754_s3 + $0x350] sm:$0xff]  ;;  %v601_v22 = vld [vmem:[%s1754_s3 + $0x2c8] sm:$0xff]  ;;  %v584_v25 = vld [vmem:[%s1754_s3 + $0x240] sm:$0xff] }
  0x3a   : > { %695 = vmatpush.msra.mxu2 %v545_v55  ;;  %715 = vmatpush.msra.mxu3 %v561_v56  ;;  %v634_v20 = vld [vmem:[%s1754_s3 + $0x3d0] sm:$0xff]  ;;  %v617_v23 = vld [vmem:[%s1754_s3 + $0x348] sm:$0xff]  ;;  %v600_v26 = vld [vmem:[%s1754_s3 + $0x2c0] sm:$0xff] }
  0x3b   : > { %656 = vmatpush.msra.mxu0 %v512_v57  ;;  %676 = vmatpush.msra.mxu1 %v528_v58  ;;  %v633_v24 = vld [vmem:[%s1754_s3 + $0x3c8] sm:$0xff]  ;;  %v616_v27 = vld [vmem:[%s1754_s3 + $0x340] sm:$0xff]  ;;  %v583_v29 = vld [vmem:[%s1754_s3 + $0x238] sm:$0xff] }
  0x3c   : > { %696 = vmatpush.msra.mxu2 %v544_v59  ;;  %716 = vmatpush.msra.mxu3 %v560_v60  ;;  %v632_v28 = vld [vmem:[%s1754_s3 + $0x3c0] sm:$0xff]  ;;  %v599_v30 = vld [vmem:[%s1754_s3 + $0x2b8] sm:$0xff]  ;;  %v582_v33 = vld [vmem:[%s1754_s3 + $0x230] sm:$0xff] }
  0x3d   : > { %721 = vmatpush.msrb.mxu0 %v591_v61  ;;  %741 = vmatpush.msrb.mxu1 %v607_v62  ;;  %v615_v31 = vld [vmem:[%s1754_s3 + $0x338] sm:$0xff]  ;;  %v598_v34 = vld [vmem:[%s1754_s3 + $0x2b0] sm:$0xff]  ;;  %v581_v37 = vld [vmem:[%s1754_s3 + $0x228] sm:$0xff] }
  0x3e   : > { %761 = vmatpush.msrb.mxu2 %v623_v63  ;;  %781 = vmatpush.msrb.mxu3 %v639_v0  ;;  %v631_v32 = vld [vmem:[%s1754_s3 + $0x3b8] sm:$0xff]  ;;  %v614_v35 = vld [vmem:[%s1754_s3 + $0x330] sm:$0xff]  ;;  %v597_v38 = vld [vmem:[%s1754_s3 + $0x2a8] sm:$0xff] }
  0x3f   : > { %722 = vmatpush.msrb.mxu0 %v590_v1  ;;  %742 = vmatpush.msrb.mxu1 %v606_v2  ;;  %v630_v36 = vld [vmem:[%s1754_s3 + $0x3b0] sm:$0xff]  ;;  %v613_v39 = vld [vmem:[%s1754_s3 + $0x328] sm:$0xff]  ;;  %v580_v42 = vld [vmem:[%s1754_s3 + $0x220] sm:$0xff] }
  0x40   : > { %762 = vmatpush.msrb.mxu2 %v622_v3  ;;  %782 = vmatpush.msrb.mxu3 %v638_v4  ;;  %v629_v40 = vld [vmem:[%s1754_s3 + $0x3a8] sm:$0xff]  ;;  %v596_v43 = vld [vmem:[%s1754_s3 + $0x2a0] sm:$0xff]  ;;  %v344_v51 = vld [vmem:[%s1752_s1 + $0x10] sm:$0xff] }
  0x41   : > { %723 = vmatpush.msrb.mxu0 %v589_v5  ;;  %743 = vmatpush.msrb.mxu1 %v605_v6  ;;  %v342_v44 = vld [vmem:[%s1752_s1] sm:$0xff]  ;;  %v343_v50 = vld [vmem:[%s1752_s1 + $0x8] sm:$0xff]  ;;  %v360_v55 = vld [vmem:[%s1752_s1 + $0x90] sm:$0xff] }
  0x42   : > { %763 = vmatpush.msrb.mxu2 %v621_v7  ;;  %783 = vmatpush.msrb.mxu3 %v637_v8  ;;  %v612_v47 = vld [vmem:[%s1754_s3 + $0x320] sm:$0xff]  ;;  %v359_v54 = vld [vmem:[%s1752_s1 + $0x88] sm:$0xff]  ;;  %v345_v56 = vld [vmem:[%s1752_s1 + $0x18] sm:$0xff] }
  0x43   : > { %724 = vmatpush.msrb.mxu0 %v588_v9  ;;  %744 = vmatpush.msrb.mxu1 %v604_v10  ;;  %v628_v48 = vld [vmem:[%s1754_s3 + $0x3a0] sm:$0xff]  ;;  %v361_v57 = vld [vmem:[%s1752_s1 + $0x98] sm:$0xff]  ;;  %v347_v63 = vld [vmem:[%s1752_s1 + $0x28] sm:$0xff] }
  0x44   : > { %764 = vmatpush.msrb.mxu2 %v620_v11  ;;  %784 = vmatpush.msrb.mxu3 %v636_v12  ;;  %v358_v49 = vld [vmem:[%s1752_s1 + $0x80] sm:$0xff]  ;;  %v579_v60 = vld [vmem:[%s1754_s3 + $0x218] sm:$0xff]  ;;  %v363_v0 = vld [vmem:[%s1752_s1 + $0xa8] sm:$0xff] }
  0x45   : > { %725 = vmatpush.msrb.mxu0 %v587_v13  ;;  %745 = vmatpush.msrb.mxu1 %v603_v14  ;;  %v1526_v53 = vld [vmem:[%s1753_s2] sm:$0xff]  ;;  %v595_v61 = vld [vmem:[%s1754_s3 + $0x298] sm:$0xff]  ;;  %v348_v1 = vld [vmem:[%s1752_s1 + $0x30] sm:$0xff] }
  0x46   : > { %765 = vmatpush.msrb.mxu2 %v619_v15  ;;  %785 = vmatpush.msrb.mxu3 %v635_v16  ;;  %v346_v58 = vld [vmem:[%s1752_s1 + $0x20] sm:$0xff]  ;;  %v611_v62 = vld [vmem:[%s1754_s3 + $0x318] sm:$0xff]  ;;  %v480_v3 = vperm.slane %v1526_v53, 0  ;;  %v481_v4 = vperm.slane %v1526_v53, 1  ;;  %v482_v5 = vperm.slane %v1526_v53, 2  ;;  %v578_v7 = vld [vmem:[%s1754_s3 + $0x210] sm:$0xff] }
  0x47   : > { %726 = vmatpush.msrb.mxu0 %v586_v17  ;;  %746 = vmatpush.msrb.mxu1 %v602_v18  ;;  %v362_v59 = vld [vmem:[%s1752_s1 + $0xa0] sm:$0xff]  ;;  %v627_v6 = vld [vmem:[%s1754_s3 + $0x398] sm:$0xff]  ;;  %v594_v8 = vld [vmem:[%s1754_s3 + $0x290] sm:$0xff]  ;;  %v483_v17 = vperm.slane %v1526_v53, 3 }
  0x48   : > { %766 = vmatpush.msrb.mxu2 %v618_v19  ;;  %786 = vmatpush.msrb.mxu3 %v634_v20  ;;  %v364_v9 = vld [vmem:[%s1752_s1 + $0xb0] sm:$0xff]  ;;  %v349_v10 = vld [vmem:[%s1752_s1 + $0x38] sm:$0xff]  ;;  %v350_v12 = vld [vmem:[%s1752_s1 + $0x40] sm:$0xff] }
  0x49   : > { %727 = vmatpush.msrb.mxu0 %v585_v21  ;;  %747 = vmatpush.msrb.mxu1 %v601_v22  ;;  %v365_v11 = vld [vmem:[%s1752_s1 + $0xb8] sm:$0xff]  ;;  %v351_v14 = vld [vmem:[%s1752_s1 + $0x48] sm:$0xff]  ;;  %v610_v18 = vld [vmem:[%s1754_s3 + $0x310] sm:$0xff] }
  0x4a   : > { %767 = vmatpush.msrb.mxu2 %v617_v23  ;;  %787 = vmatpush.msrb.mxu3 %v633_v24  ;;  %v626_v19 = vld [vmem:[%s1754_s3 + $0x390] sm:$0xff]  ;;  %v577_v20 = vld [vmem:[%s1754_s3 + $0x208] sm:$0xff]  ;;  %v366_v21 = vld [vmem:[%s1752_s1 + $0xc0] sm:$0xff] }
  0x4b   : > { %728 = vmatpush.msrb.mxu0 %v584_v25  ;;  %748 = vmatpush.msrb.mxu1 %v600_v26  ;;  %v367_v22 = vld [vmem:[%s1752_s1 + $0xc8] sm:$0xff] }
  0x4c   : > { %768 = vmatpush.msrb.mxu2 %v616_v27  ;;  %788 = vmatpush.msrb.mxu3 %v632_v28  ;;  %v593_v26 = vld [vmem:[%s1754_s3 + $0x288] sm:$0xff] }
  0x4d   : > { %729 = vmatpush.msrb.mxu0 %v583_v29  ;;  %749 = vmatpush.msrb.mxu1 %v599_v30  ;;  %v609_v27 = vld [vmem:[%s1754_s3 + $0x308] sm:$0xff]  ;;  %v484_v29 = vperm.slane %v1526_v53, 4 }
  0x4e   : > { %769 = vmatpush.msrb.mxu2 %v615_v31  ;;  %789 = vmatpush.msrb.mxu3 %v631_v32  ;;  %v625_v28 = vld [vmem:[%s1754_s3 + $0x388] sm:$0xff]  ;;  %v352_v31 = vld [vmem:[%s1752_s1 + $0x50] sm:$0xff]  ;;  %v353_v32 = vld [vmem:[%s1752_s1 + $0x58] sm:$0xff] }
  0x4f   : > { %730 = vmatpush.msrb.mxu0 %v582_v33  ;;  %750 = vmatpush.msrb.mxu1 %v598_v34  ;;  %v576_v34 = vld [vmem:[%s1754_s3 + $0x200] sm:$0xff] }
  0x50   : > { %770 = vmatpush.msrb.mxu2 %v614_v35  ;;  %790 = vmatpush.msrb.mxu3 %v630_v36 }
  0x51   : > { %731 = vmatpush.msrb.mxu0 %v581_v37  ;;  %751 = vmatpush.msrb.mxu1 %v597_v38  ;;  %v485_v37 = vperm.slane %v1526_v53, 5 }
  0x52   : > { %771 = vmatpush.msrb.mxu2 %v613_v39  ;;  %791 = vmatpush.msrb.mxu3 %v629_v40  ;;  %v368_v40 = vld [vmem:[%s1752_s1 + $0xd0] sm:$0xff] }
  0x53   : > { %732 = vmatpush.msrb.mxu0 %v580_v42  ;;  %752 = vmatpush.msrb.mxu1 %v596_v43  ;;  %v592_v42 = vld [vmem:[%s1754_s3 + $0x280] sm:$0xff] }
  0x54   : > { %772 = vmatpush.msrb.mxu2 %v612_v47  ;;  %792 = vmatpush.msrb.mxu3 %v628_v48  ;;  %v608_v48 = vld [vmem:[%s1754_s3 + $0x300] sm:$0xff] }
  0x55   : > { %733 = vmatpush.msrb.mxu0 %v579_v60  ;;  %753 = vmatpush.msrb.mxu1 %v595_v61  ;;  %v624_v60 = vld [vmem:[%s1754_s3 + $0x380] sm:$0xff]  ;;  %v355_v61 = vld [vmem:[%s1752_s1 + $0x68] sm:$0xff] }
  0x56   : > { %773 = vmatpush.msrb.mxu2 %v611_v62  ;;  %793 = vmatpush.msrb.mxu3 %v627_v6 }
  0x57   : > { %734 = vmatpush.msrb.mxu0 %v578_v7  ;;  %754 = vmatpush.msrb.mxu1 %v594_v8 }
  0x58   : > { %774 = vmatpush.msrb.mxu2 %v610_v18  ;;  %794 = vmatpush.msrb.mxu3 %v626_v19 }
  0x59   : > { %735 = vmatpush.msrb.mxu0 %v577_v20  ;;  %755 = vmatpush.msrb.mxu1 %v593_v26  ;;  %v357_v20 = vld [vmem:[%s1752_s1 + $0x78] sm:$0xff] }
  0x5a   : > { %775 = vmatpush.msrb.mxu2 %v609_v27  ;;  %795 = vmatpush.msrb.mxu3 %v625_v28 }
  0x5b   : > { %736 = vmatpush.msrb.mxu0 %v576_v34  ;;  %756 = vmatpush.msrb.mxu1 %v592_v42 }
  0x5c   : > { %776 = vmatpush.msrb.mxu2 %v608_v48  ;;  %796 = vmatpush.msrb.mxu3 %v624_v60 }
  0x9f   : > { %v328_v41 = vpop.xlane.xlu0 %327 }
  0xa0   : > { %v1504_v45 = vmul.f32 0.00390625, %v328_v41  ;;  %v334_v46 = vpop.xlane.xlu1 %333  ;;  %v369_v41 = vld [vmem:[%s1752_s1 + $0xd8] sm:$0xff] }
  0xa1   : > { %v1521_v52 = vmul.f32 0.00390625, %v334_v46 }
  0xa2   : > { %v1565_v2 = vmul.f32 %v342_v44, %v1504_v45  ;;  %v375_v15 = vmul.f32 %v343_v50, %v1504_v45  ;;  %v376_v16 = vmul.f32 %v344_v51, %v1504_v45  ;;  %v377_v25 = vmul.f32 %v345_v56, %v1504_v45  ;;  %v370_v50 = vld [vmem:[%s1752_s1 + $0xe0] sm:$0xff] }
  0xa3   : > { %v1592_v13 = vmul.f32 %v358_v49, %v1521_v52  ;;  %v1616_v23 = vmul.f32 %v359_v54, %v1521_v52  ;;  %v1619_v24 = vmul.f32 %v360_v55, %v1521_v52  ;;  %v393_v33 = vmul.f32 %v361_v57, %v1521_v52  ;;  %v354_v49 = vld [vmem:[%s1752_s1 + $0x60] sm:$0xff] }
  0xa4   : > { %v378_v35 = vmul.f32 %v346_v58, %v1504_v45  ;;  %v394_v36 = vmul.f32 %v362_v59, %v1521_v52  ;;  %v379_v43 = vmul.f32 %v347_v63, %v1504_v45  ;;  %v395_v44 = vmul.f32 %v363_v0, %v1521_v52 }
  0xa5   : > { %v380_v46 = vmul.f32 %v348_v1, %v1504_v45  ;;  %v396_v51 = vmul.f32 %v364_v9, %v1521_v52  ;;  %v381_v54 = vmul.f32 %v349_v10, %v1504_v45  ;;  %v1669_v55 = vmul.f32 %v365_v11, %v1521_v52  ;;  %v371_v45 = vld [vmem:[%s1752_s1 + $0xe8] sm:$0xff]  ;;  %v356_v9 = vld [vmem:[%s1752_s1 + $0x70] sm:$0xff] }
  0xa6   : > { %v372_v10 = vld [vmem:[%s1752_s1 + $0xf0] sm:$0xff] }
  0xa7   : > { %v331_v30 = vpop.xlane.xlu0 %330 }
  0xa8   : > { %v339_v38 = vmul.f32 0.00390625, %v331_v30  ;;  %v337_v39 = vpop.xlane.xlu1 %336 }
  0xa9   : > { %v341_v47 = vmul.f32 0.00390625, %v337_v39 }
  0xaa   : > { %v382_v56 = vmul.f32 %v350_v12, %v339_v38  ;;  %v383_v57 = vmul.f32 %v351_v14, %v339_v38  ;;  %v384_v58 = vmul.f32 %v352_v31, %v339_v38  ;;  %v385_v59 = vmul.f32 %v353_v32, %v339_v38 }
  0xab   : > { %v398_v62 = vmul.f32 %v366_v21, %v341_v47  ;;  %v399_v52 = vmul.f32 %v367_v22, %v341_v47  ;;  %v400_v63 = vmul.f32 %v368_v40, %v341_v47  ;;  %v401_v0 = vmul.f32 %v369_v41, %v341_v47 }
  0xac   : > { %v406_v1 = vadd.f32 %v382_v56, %v1565_v2  ;;  %v415_v6 = vadd.f32 %v383_v57, %v375_v15  ;;  %v424_v7 = vadd.f32 %v384_v58, %v376_v16  ;;  %v433_v8 = vadd.f32 %v385_v59, %v377_v25 }
  0xad   : > { %v386_v11 = vmul.f32 %v354_v49, %v339_v38  ;;  %v402_v12 = vmul.f32 %v370_v50, %v341_v47  ;;  %v387_v14 = vmul.f32 %v355_v61, %v339_v38  ;;  %v403_v18 = vmul.f32 %v371_v45, %v341_v47 }
  0xae   : > { %v407_v19 = vadd.f32 %v406_v1, %v1592_v13  ;;  %v416_v2 = vadd.f32 %v415_v6, %v1616_v23  ;;  %v425_v15 = vadd.f32 %v424_v7, %v1619_v24  ;;  %v434_v16 = vadd.f32 %v433_v8, %v393_v33  ;;  %v373_v13 = vld [vmem:[%s1752_s1 + $0xf8] sm:$0xff] }
  0xaf   : > { %v442_v21 = vadd.f32 %v386_v11, %v378_v35  ;;  %v451_v22 = vadd.f32 %v387_v14, %v379_v43  ;;  %v388_v25 = vmul.f32 %v356_v9, %v339_v38  ;;  %v404_v26 = vmul.f32 %v372_v10, %v341_v47 }
  0xb0   : > { %v408_v27 = vadd.f32 %v407_v19, %v398_v62  ;;  %v417_v28 = vadd.f32 %v416_v2, %v399_v52  ;;  %v426_v30 = vadd.f32 %v425_v15, %v400_v63  ;;  %v435_v31 = vadd.f32 %v434_v16, %v401_v0 }
  0xb1   : > { %v443_v23 = vadd.f32 %v442_v21, %v394_v36  ;;  %v452_v32 = vadd.f32 %v451_v22, %v395_v44  ;;  %v460_v24 = vadd.f32 %v388_v25, %v380_v46  ;;  %v389_v33 = vmul.f32 %v357_v20, %v339_v38 }
  0xb2   : > { %v409_v34 = vrot.slane %v408_v27, 4  ;;  %v418_v39 = vrot.slane %v417_v28, 4  ;;  %v427_v40 = vrot.slane %v426_v30, 4  ;;  %v436_v41 = vrot.slane %v435_v31, 4 }
  0xb3   : > { %v444_v35 = vadd.f32 %v443_v23, %v402_v12  ;;  %v453_v42 = vadd.f32 %v452_v32, %v403_v18  ;;  %v461_v43 = vadd.f32 %v460_v24, %v396_v51  ;;  %v405_v48 = vmul.f32 %v373_v13, %v341_v47 }
  0xb4   : > { %v410_v49 = vadd.f32 %v409_v34, %v408_v27  ;;  %v419_v50 = vadd.f32 %v418_v39, %v417_v28  ;;  %v428_v56 = vadd.f32 %v427_v40, %v426_v30  ;;  %v437_v57 = vadd.f32 %v436_v41, %v435_v31 }
  0xb5   : > { %v445_v58 = vrot.slane %v444_v35, 4  ;;  %v454_v59 = vrot.slane %v453_v42, 4  ;;  %v462_v60 = vadd.f32 %v461_v43, %v404_v26  ;;  %v469_v61 = vadd.f32 %v389_v33, %v381_v54 }
  0xb6   : > { %v411_v36 = vrot.slane %v410_v49, 2  ;;  %v420_v44 = vrot.slane %v419_v50, 2  ;;  %v429_v46 = vrot.slane %v428_v56, 2  ;;  %v438_v38 = vrot.slane %v437_v57, 2 }
  0xb7   : > { %v446_v45 = vadd.f32 %v445_v58, %v444_v35  ;;  %v455_v62 = vadd.f32 %v454_v59, %v453_v42  ;;  %v463_v52 = vrot.slane %v462_v60, 4  ;;  %v470_v63 = vadd.f32 %v469_v61, %v1669_v55 }
  0xb8   : > { %v412_v0 = vadd.f32 %v411_v36, %v410_v49  ;;  %v421_v51 = vadd.f32 %v420_v44, %v419_v50  ;;  %v430_v47 = vadd.f32 %v429_v46, %v428_v56  ;;  %v439_v1 = vadd.f32 %v438_v38, %v437_v57 }
  0xb9   : > { %v447_v6 = vrot.slane %v446_v45, 2  ;;  %v456_v7 = vrot.slane %v455_v62, 2  ;;  %v464_v8 = vadd.f32 %v463_v52, %v462_v60  ;;  %v471_v9 = vadd.f32 %v470_v63, %v405_v48 }
  0xba   : > { %v413_v10 = vrot.slane %v412_v0, 1  ;;  %v422_v11 = vrot.slane %v421_v51, 1  ;;  %v431_v54 = vrot.slane %v430_v47, 1  ;;  %v440_v12 = vrot.slane %v439_v1, 1 }
  0xbb   : > { %v448_v14 = vadd.f32 %v447_v6, %v446_v45  ;;  %v457_v18 = vadd.f32 %v456_v7, %v455_v62  ;;  %v465_v19 = vrot.slane %v464_v8, 2  ;;  %v472_v2 = vrot.slane %v471_v9, 4 }
  0xbc   : > { %v414_v15 = vadd.f32 %v413_v10, %v412_v0  ;;  %v423_v16 = vadd.f32 %v422_v11, %v421_v51  ;;  %v432_v20 = vadd.f32 %v431_v54, %v430_v47  ;;  %v441_v55 = vadd.f32 %v440_v12, %v439_v1 }
  0xbd   : > { %v449_v21 = vrot.slane %v448_v14, 1  ;;  %v458_v22 = vrot.slane %v457_v18, 1  ;;  %v466_v25 = vadd.f32 %v465_v19, %v464_v8  ;;  %v473_v26 = vadd.f32 %v472_v2, %v471_v9 }
  0xbe   : > { %v496_v27 = vadd.f32 %v480_v3, %v414_v15  ;;  %v497_v28 = vadd.f32 %v481_v4, %v423_v16  ;;  %v498_v30 = vadd.f32 %v482_v5, %v432_v20  ;;  %v499_v31 = vadd.f32 %v483_v17, %v441_v55 }
  0xbf   : > { %v450_v13 = vadd.f32 %v449_v21, %v448_v14  ;;  %v459_v23 = vadd.f32 %v458_v22, %v457_v18  ;;  %v467_v32 = vrot.slane %v466_v25, 1  ;;  %v474_v24 = vrot.slane %v473_v26, 2 }
  0xc0   : > { %v504_v33 = vmax.f32 %v496_v27, 0.0  ;;  %v505_v34 = vmax.f32 %v497_v28, 0.0  ;;  %v506_v39 = vmax.f32 %v498_v30, 0.0  ;;  %v507_v40 = vmax.f32 %v499_v31, 0.0 }
  0xc1   : > { %v468_v41 = vadd.f32 %v467_v32, %v466_v25  ;;  %v486_v3 = vperm.slane %v1526_v53, 6  ;;  %v475_v35 = vadd.f32 %v474_v24, %v473_v26  ;;  %v487_v5 = vperm.slane %v1526_v53, 7 }
  0xc2   : > { %657 = vmatmul.f32.vlgmr.msra.gmra.mxu0 %v504_v33  ;;  %677 = vmatmul.f32.vlgmr.msra.gmra.mxu1 %v505_v34  ;;  %v500_v17 = vadd.f32 %v484_v29, %v450_v13  ;;  %v501_v42 = vadd.f32 %v485_v37, %v459_v23  ;;  %v640_v29 = vld [vmem:[%s1755_s4] sm:$0x1] }
  0xc3   : > { %697 = vmatmul.f32.vlgmr.msra.gmra.mxu2 %v506_v39  ;;  %717 = vmatmul.f32.vlgmr.msra.gmra.mxu3 %v507_v40  ;;  %v476_v4 = vrot.slane %v475_v35, 1  ;;  %v502_v43 = vadd.f32 %v486_v3, %v468_v41 }
  0xc4   : > { %v508_v50 = vmax.f32 %v500_v17, 0.0  ;;  %v509_v56 = vmax.f32 %v501_v42, 0.0 }
  0xc5   : > { %v477_v48 = vadd.f32 %v476_v4, %v475_v35  ;;  %v510_v57 = vmax.f32 %v502_v43, 0.0 }
  0xc7   : > { %v503_v49 = vadd.f32 %v487_v5, %v477_v48 }
  0xc9   : > { %v511_v58 = vmax.f32 %v503_v49, 0.0 }
  0xca   : > { %737 = vmatmul.f32.vlgmr.msrb.gmra.mxu0 %v508_v50  ;;  %757 = vmatmul.f32.vlgmr.msrb.gmra.mxu1 %v509_v56 }
  0xcb   : > { %777 = vmatmul.f32.vlgmr.msrb.gmra.mxu2 %v510_v57  ;;  %797 = vmatmul.f32.vlgmr.msrb.gmra.mxu3 %v511_v58 }
 0x13f   : > { %v658_v59 = vpop.f32.mrf.mxu0  ;;  %v678_v37 = vpop.f32.mrf.mxu1 }
 0x140   : > { %v659_v53 = vadd.f32 %v658_v59, %v640_v29 }
 0x142   : > { %v679_v60 = vadd.f32 %v678_v37, %v659_v53 }
 0x146   : > { %v698_v61 = vpop.f32.mrf.mxu2  ;;  %v718_v36 = vpop.f32.mrf.mxu3 }
 0x147   : > { %v699_v44 = vadd.f32 %v698_v61, %v679_v60  ;;  %v738_v38 = vpop.f32.mrf.mxu0  ;;  %v758_v62 = vpop.f32.mrf.mxu1 }
 0x149   : > { %v719_v46 = vadd.f32 %v718_v36, %v699_v44 }
 0x14b   : > { %v739_v45 = vadd.f32 %v738_v38, %v719_v46 }
 0x14d   : > { %v759_v52 = vadd.f32 %v758_v62, %v739_v45 }
 0x14e   : > { %v778_v63 = vpop.f32.mrf.mxu2  ;;  %v798_v51 = vpop.f32.mrf.mxu3 }
 0x14f   : > { %v779_v0 = vadd.f32 %v778_v63, %v759_v52 }
 0x151   : > { %v799_v47 = vadd.f32 %v798_v51, %v779_v0 }
 0x153   : > { %802 = vst.msk [vmem:[%s241_s11] sm:$0x1] %vm801_vm1, %v799_v47 }
 0x154   : > { %981 = shalt.err (!%p978_p5)
}
 0x155   : > { %898 = dma.vmem_to_hbm [thread:$0]  (%p1105_p4), %s815_s12, 16, %s817_s13, %s804_s14  }
 0x156 PF: > { %p904_p6 = scmp.ge.s32.totalorder %s1032_s23, 2  ;;  %s828_s29 = sand.u32 1, %s1012_s18  }
 0x157   : > { %s829_s27 = scalar_lea.sflag [#allocation4], %s828_s29 }
 0x158   : > { %p901_p7 = pnand %p904_p6, %p1112_p8 }
 0x15a   : > { %p902_p9 = pneg %p901_p7 }
 0x15c   : > { %1007 = dma.done.wait (%p902_p9), %s829_s27, 16  }
 0x15d   : > { %1009 = vsyncadd (%p902_p9), %s829_s27, 4294967280  ;;  %s18_s23 = sadd.s32 1, %s1032_s23   ;;  %s1759_s18 = smov %s1016_s19 }
 0x15e   : > { %p15_p10 = scmp.ge.s32.totalorder %s18_s23, 4   ;;  %s1760_s19 = smov %s1020_s20 }
 0x15f   : > { %s1761_s20 = smov %s1118_s6  ;;  %s1762_s21 = smov %s1028_s22 }
 0x160   : > { %s1763_s22 = smov %s1765_s26  ;;  %17 = sbr.rel (!%p15_p10) target bundleno = 4 (0x4), region = 83 }
 0x165   :  { %834 = vsyncpa [#allocation4], 1 }
 0x166   :  { %836 = vsyncpa [#allocation4 + $0x1], 1 }

</bundles_post_ra>
